<compile_context>
chip_gen: v7x
topology: tpu7x:2x2x1
jax: 0.10.0
libtpu: 0.0.40
codegen_flags: <defaults>
</compile_context>

<pallas_src>
import functools

import jax
import jax.numpy as jnp
from jax import lax
from jax.experimental import pallas as pl
from jax.experimental.pallas import tpu as pltpu

CHANNELS = 3
LEAK = 0.1
NUM_CLASSES = 10
W_G = 4
ATT_DIM = 16          # attention_size -> query/key channels (128 // 8)
QK_PAD = 128          # q/k output channels zero-padded to a full lane tile
FEAT = W_G * W_G * 512


# ---------------------------------------------------------------------------
# helpers
# ---------------------------------------------------------------------------
def _round_up(x, m):
    return ((x + m - 1) // m) * m


def spectral_normalize(w, u, power_iterations=1, eps=1e-12):
    """Replicates SpectralNorm._update_u_v forward semantics (w_bar / sigma)."""
    out_dim = w.shape[0]
    w2 = w.reshape(out_dim, -1)
    v = None
    for _ in range(power_iterations):
        v = w2.T @ u
        v = v / (jnp.linalg.norm(v) + eps)
        u = w2 @ v
        u = u / (jnp.linalg.norm(u) + eps)
    sigma = u @ (w2 @ v)
    return w / sigma


def _prep_matmul_weights(wmat, b):
    """wmat: (K, N) f32, b: (N,) f32 -> pre-padded bf16 weight + f32 bias row."""
    K, N = wmat.shape
    Kp = _round_up(max(K, 128), 128)
    Np = _round_up(max(N, 128), 128)
    w_p = jnp.zeros((Kp, Np), jnp.bfloat16).at[:K, :N].set(wmat.astype(jnp.bfloat16))
    b_p = jnp.zeros((1, Np), jnp.float32).at[0, :N].set(b)
    return w_p, b_p


# ---------------------------------------------------------------------------
# Pallas kernel 1: M/N/K-tiled matmul + bias + optional LeakyReLU
# (all convolutions via im2col and the attention QKV projection)
# f32 accumulation in VMEM scratch, bf16 store on the last K step.
# ---------------------------------------------------------------------------
def _matmul_bias_act_kernel(a_ref, b_ref, bias_ref, o_ref, acc_ref, *, leak):
    k = pl.program_id(2)

    @pl.when(k == 0)
    def _():
        acc_ref[...] = jnp.zeros_like(acc_ref)

    acc_ref[...] += jnp.dot(a_ref[...], b_ref[...],
                            preferred_element_type=jnp.float32)

    @pl.when(k == pl.num_programs(2) - 1)
    def _():
        out = acc_ref[...] + bias_ref[...]
        if leak is not None:
            out = jnp.where(out >= 0, out, leak * out)
        o_ref[...] = out.astype(o_ref.dtype)


def matmul_bias_act(a, w_p, bias_p, n_out, *, leak=None, out_dtype=jnp.bfloat16):
    """a: (M, K); w_p: (Kp, Np) bf16 pre-padded; bias_p: (1, Np) f32 -> (M, n_out)."""
    M, K = a.shape
    Kp, Np = w_p.shape
    assert K <= Kp and Kp % 128 == 0 and Np % 128 == 0

    Mp0 = _round_up(max(M, 16), 16)
    tm = min(512, Mp0)
    Mp = _round_up(Mp0, tm)
    tn = next(t for t in (512, 256, 128) if Np % t == 0)
    # tk restricted to multiples of 128 (lane-aligned blocks), Kp is a 128-multiple.
    tk = next(t for t in (512, 384, 256, 128) if Kp % t == 0)

    # v7x: make sure at least 2 blocks exist along the parallel (M, N) axes.
    if (Mp // tm) * (Np // tn) == 1:
        if tm >= 32 and tm % 32 == 0:
            tm //= 2
        elif tn >= 256:
            tn //= 2

    a_bf = a.astype(jnp.bfloat16)
    if (Mp, Kp) != (M, K):                       # skip the copy when already aligned
        a_bf = jnp.pad(a_bf, ((0, Mp - M), (0, Kp - K)))

    grid = (Mp // tm, Np // tn, Kp // tk)
    out = pl.pallas_call(
        functools.partial(_matmul_bias_act_kernel, leak=leak),
        out_shape=jax.ShapeDtypeStruct((Mp, Np), out_dtype),
        grid_spec=pltpu.PrefetchScalarGridSpec(
            num_scalar_prefetch=0,
            grid=grid,
            in_specs=[
                pl.BlockSpec((tm, tk), lambda i, j, k: (i, k)),
                pl.BlockSpec((tk, tn), lambda i, j, k: (k, j)),
                pl.BlockSpec((1, tn), lambda i, j, k: (0, j)),
            ],
            out_specs=pl.BlockSpec((tm, tn), lambda i, j, k: (i, j)),
            scratch_shapes=[pltpu.VMEM((tm, tn), jnp.float32)],
        ),
        compiler_params=pltpu.CompilerParams(
            dimension_semantics=("parallel", "parallel", "arbitrary")),
    )(a_bf, w_p, bias_p)
    if (Mp, Np) != (M, n_out):
        out = out[:M, :n_out]
    return out


# ---------------------------------------------------------------------------
# Pallas kernel 2: SAGAN self-attention core (energy, softmax, attn@v, gamma-residual)
# QKV projections are done with the batched matmul kernel; q/k are zero-padded to 128
# output channels so the kernel receives one lane-dense bf16 (N_pos, 384) block.
# ---------------------------------------------------------------------------
def _attention_kernel(x_ref, qkv_ref, gamma_ref, o_ref):
    x = x_ref[0]                                             # (N_pos, C) bf16
    qkv = qkv_ref[0]                                         # (N_pos, 2*QK_PAD + C) bf16
    c = x.shape[-1]
    q = qkv[:, :QK_PAD]                                      # zero-padded beyond ATT_DIM
    k = qkv[:, QK_PAD:2 * QK_PAD]
    v = qkv[:, 2 * QK_PAD:2 * QK_PAD + c]
    # q @ k^T without an explicit transpose (zero padding contributes nothing).
    energy = lax.dot_general(q, k, (((1,), (1,)), ((), ())),
                             preferred_element_type=jnp.float32)   # (N_pos, N_pos)
    energy = energy - jnp.max(energy, axis=-1, keepdims=True)
    p = jnp.exp(energy)
    attn = p * pl.reciprocal(jnp.sum(p, axis=-1, keepdims=True), approx=True)
    out = jnp.dot(attn.astype(v.dtype), v,
                  preferred_element_type=jnp.float32)              # (N_pos, C) f32
    gamma = gamma_ref[0, 0]
    o_ref[0] = (gamma * out + x.astype(jnp.float32)).astype(o_ref.dtype)


def self_attention(x_flat, att_params):
    """x_flat: (B, N_pos, C) bf16 -> (B, N_pos, C) bf16 (att + att_post fused)."""
    B, N_pos, C = x_flat.shape
    w_qkv_p, b_qkv_p, n_qkv, gamma = att_params

    # Batched QKV projection: one MXU-friendly (B*N_pos, C) matmul; output stays bf16
    # and already lane-aligned (n_qkv = 384), so no slicing/padding is needed.
    qkv = matmul_bias_act(x_flat.reshape(B * N_pos, C), w_qkv_p, b_qkv_p, n_qkv)
    qkv = qkv.reshape(B, N_pos, n_qkv)

    return pl.pallas_call(
        _attention_kernel,
        out_shape=jax.ShapeDtypeStruct((B, N_pos, C), jnp.bfloat16),
        grid_spec=pltpu.PrefetchScalarGridSpec(
            num_scalar_prefetch=0,
            grid=(B,),
            in_specs=[
                pl.BlockSpec((1, N_pos, C), lambda b: (b, 0, 0)),
                pl.BlockSpec((1, N_pos, n_qkv), lambda b: (b, 0, 0)),
                pl.BlockSpec(memory_space=pltpu.MemorySpace.SMEM),   # gamma (1,1) scalar
            ],
            out_specs=pl.BlockSpec((1, N_pos, C), lambda b: (b, 0, 0)),
        ),
        compiler_params=pltpu.CompilerParams(
            dimension_semantics=("parallel",)),
    )(x_flat, qkv, gamma)


# ---------------------------------------------------------------------------
# Pallas kernel 3: fused head -- fc(m) and the cGAN projection sum(m * embed(c))
# in a single pass over the (B, 8192) feature matrix. The class embedding is a
# label-driven row gather from the (num_classes, 8192) table (scalar prefetch),
# replacing the old one-hot matmul pallas_call entirely.
# ---------------------------------------------------------------------------
def _head_kernel(labels_ref, m_ref, tab_ref, wfc_ref, bfc_ref, fc_ref, proj_ref, *, batch):
    m = m_ref[...].astype(jnp.float32)                            # (B, FEAT)
    fc_ref[...] = (jnp.sum(m * wfc_ref[...], axis=-1, keepdims=True)
                   + bfc_ref[0, 0])
    rows = [tab_ref[pl.ds(labels_ref[b], 1), :] for b in range(batch)]
    e = jnp.concatenate(rows, axis=0) if batch > 1 else rows[0]   # (B, FEAT) f32
    proj_ref[...] = jnp.sum(m * e, axis=-1, keepdims=True)


def fused_head(m_flat, labels, table_p, w_fc_row, b_fc):
    """m_flat: (B, FEAT) bf16; labels: (B,) i32; table_p: (16, FEAT) f32."""
    B, K = m_flat.shape
    nc_p = table_p.shape[0]
    fc, proj = pl.pallas_call(
        functools.partial(_head_kernel, batch=B),
        out_shape=(jax.ShapeDtypeStruct((B, 1), jnp.float32),
                   jax.ShapeDtypeStruct((B, 1), jnp.float32)),
        grid_spec=pltpu.PrefetchScalarGridSpec(
            num_scalar_prefetch=1,
            grid=(1,),
            in_specs=[
                pl.BlockSpec((B, K), lambda i, lab: (0, 0)),
                pl.BlockSpec((nc_p, K), lambda i, lab: (0, 0)),
                pl.BlockSpec((1, K), lambda i, lab: (0, 0)),
                pl.BlockSpec(memory_space=pltpu.MemorySpace.SMEM),  # fc bias scalar
            ],
            out_specs=[pl.BlockSpec((B, 1), lambda i, lab: (0, 0)),
                       pl.BlockSpec((B, 1), lambda i, lab: (0, 0))],
        ),
        compiler_params=pltpu.CompilerParams(dimension_semantics=("arbitrary",)),
    )(labels, m_flat, table_p, w_fc_row, b_fc)
    return fc, proj


# ---------------------------------------------------------------------------
# conv = bf16 im2col (single materialization) + Pallas tiled matmul kernel
# ---------------------------------------------------------------------------
def conv2d_lrelu(x_nhwc, conv_params, *, ksz, stride, pad, leak):
    """x_nhwc: (B,H,W,Cin); weights pre-permuted to (kh*kw*Cin, Cout) and pre-padded."""
    w_p, b_p, cout = conv_params
    x_bf = x_nhwc.astype(jnp.bfloat16)
    B, H, W, Cin = x_bf.shape
    xp = jnp.pad(x_bf, ((0, 0), (pad, pad), (pad, pad), (0, 0)))
    Ho = (H + 2 * pad - ksz) // stride + 1
    Wo = (W + 2 * pad - ksz) // stride + 1
    cols = []
    for i in range(ksz):
        for j in range(ksz):
            cols.append(xp[:, i:i + stride * Ho:stride,
                           j:j + stride * Wo:stride, :])       # (B,Ho,Wo,Cin) bf16
    patches = jnp.stack(cols, axis=3)                          # (B,Ho,Wo,kh*kw,Cin)
    a = patches.reshape(B * Ho * Wo, ksz * ksz * Cin)          # natural (kh,kw,cin) order
    out = matmul_bias_act(a, w_p, b_p, cout, leak=leak)        # bf16 activations
    return out.reshape(B, Ho, Wo, cout)


# ---------------------------------------------------------------------------
# parameter construction (spectral-normalized, pre-permuted / pre-padded at init)
# ---------------------------------------------------------------------------
def _sn_conv_prepped(key, cout, cin, ksz):
    k1, k2, k3 = jax.random.split(key, 3)
    w = jax.random.normal(k1, (cout, cin, ksz, ksz), jnp.float32) * 0.05
    b = jax.random.normal(k2, (cout,), jnp.float32) * 0.01
    u = jax.random.normal(k3, (cout,), jnp.float32)
    w = spectral_normalize(w, u)
    # reorder reduction axis to the natural im2col stack order (kh, kw, cin)
    wmat = jnp.transpose(w, (2, 3, 1, 0)).reshape(ksz * ksz * cin, cout)
    w_p, b_p = _prep_matmul_weights(wmat, b)
    return (w_p, b_p, cout)


def _sn_linear(key, out_f, in_f):
    k1, k2, k3 = jax.random.split(key, 3)
    w = jax.random.normal(k1, (out_f, in_f), jnp.float32) * 0.02
    b = jax.random.normal(k2, (out_f,), jnp.float32) * 0.01
    u = jax.random.normal(k3, (out_f,), jnp.float32)
    return spectral_normalize(w, u), b


def init_params(key):
    keys = jax.random.split(key, 16)
    p = {}
    p["conv1"] = _sn_conv_prepped(keys[0], 64, CHANNELS, 3)
    p["conv2"] = _sn_conv_prepped(keys[1], 64, 64, 4)
    p["conv3"] = _sn_conv_prepped(keys[2], 128, 64, 3)
    p["conv4"] = _sn_conv_prepped(keys[3], 128, 128, 4)
    p["conv5"] = _sn_conv_prepped(keys[4], 256, 128, 3)
    p["conv6"] = _sn_conv_prepped(keys[5], 256, 256, 4)
    p["conv7"] = _sn_conv_prepped(keys[6], 512, 256, 3)

    # class embedding: embed(onehot(label)) == W_e^T[label] + b_e -> a (10, 8192) table,
    # row-padded to 16 for a clean full-array VMEM block; gathered inside the head kernel.
    w_e, b_e = _sn_linear(keys[7], FEAT, NUM_CLASSES)                 # (8192, 10), (8192,)
    table = w_e.T + b_e[None, :]                                      # (10, 8192)
    p["embed_table"] = jnp.zeros((16, FEAT), jnp.float32).at[:NUM_CLASSES].set(table)

    w_fc, b_fc = _sn_linear(keys[8], 1, FEAT)                         # (1, 8192)
    p["fc"] = (w_fc.reshape(1, FEAT), b_fc.reshape(1, 1))             # fused-head params

    # SAGAN self-attention (1x1 convs). q/k output channels zero-padded to 128 so the
    # concatenated QKV projection output is fully lane-dense (384 = 3 * 128).
    def qkv(key_, cout, cin):
        kw_, kb_ = jax.random.split(key_)
        w = jax.random.normal(kw_, (cout, cin), jnp.float32) * 0.05
        b = jax.random.normal(kb_, (cout,), jnp.float32) * 0.01
        return w.T, b                                                 # (Cin, Cout), (Cout,)

    wq, bq = qkv(keys[9], ATT_DIM, 128)
    wk, bk = qkv(keys[10], ATT_DIM, 128)
    wv, bv = qkv(keys[11], 128, 128)
    wq_p = jnp.zeros((128, QK_PAD), jnp.float32).at[:, :ATT_DIM].set(wq)
    wk_p = jnp.zeros((128, QK_PAD), jnp.float32).at[:, :ATT_DIM].set(wk)
    bq_p = jnp.zeros((QK_PAD,), jnp.float32).at[:ATT_DIM].set(bq)
    bk_p = jnp.zeros((QK_PAD,), jnp.float32).at[:ATT_DIM].set(bk)
    w_cat = jnp.concatenate([wq_p, wk_p, wv], axis=1)                 # (128, 384)
    b_cat = jnp.concatenate([bq_p, bk_p, bv], axis=0)                 # (384,)
    wqkv_p, bqkv_p = _prep_matmul_weights(w_cat, b_cat)
    gamma = jnp.zeros((1, 1), jnp.float32)                            # nn.Parameter(torch.zeros(1))
    p["att"] = (wqkv_p, bqkv_p, int(w_cat.shape[1]), gamma)
    return p


# ---------------------------------------------------------------------------
# forward pass
# ---------------------------------------------------------------------------
def discriminator_forward(params, x_nchw, c):
    """x_nchw: (B,3,32,32) f32; c: (B,10) one-hot class labels (cGAN usage)."""
    B = x_nchw.shape[0]
    # embed(c) for one-hot c is a row gather of the embedding table; recover the label.
    labels = jnp.argmax(c, axis=-1).astype(jnp.int32)

    m = jnp.transpose(x_nchw, (0, 2, 3, 1))                    # NCHW -> NHWC

    m = conv2d_lrelu(m, params["conv1"], ksz=3, stride=1, pad=1, leak=LEAK)  # 32x32x64
    m = conv2d_lrelu(m, params["conv2"], ksz=4, stride=2, pad=1, leak=LEAK)  # 16x16x64
    m = conv2d_lrelu(m, params["conv3"], ksz=3, stride=1, pad=1, leak=LEAK)  # 16x16x128
    m = conv2d_lrelu(m, params["conv4"], ksz=4, stride=2, pad=1, leak=LEAK)  # 8x8x128

    # self-attention at 8x8x128 (att + att_post; attention map stays internal)
    Hs, Ws, Cs = m.shape[1], m.shape[2], m.shape[3]
    m = self_attention(m.reshape(B, Hs * Ws, Cs), params["att"]).reshape(B, Hs, Ws, Cs)

    m = conv2d_lrelu(m, params["conv5"], ksz=3, stride=1, pad=1, leak=LEAK)  # 8x8x256
    m = conv2d_lrelu(m, params["conv6"], ksz=4, stride=2, pad=1, leak=LEAK)  # 4x4x256
    m = conv2d_lrelu(m, params["conv7"], ksz=3, stride=1, pad=1, leak=LEAK)  # 4x4x512

    # m.view(-1, 4*4*512) in PyTorch flattens NCHW -> (C, H, W) order
    m_flat = jnp.transpose(m, (0, 3, 1, 2)).reshape(B, FEAT)                 # (B, 8192) bf16

    fc_out, proj = fused_head(m_flat, labels, params["embed_table"],
                              *params["fc"])                                 # (B,1), (B,1)

    # (B,1) + (B,1,1) broadcasts to (B,B,1), matching the PyTorch forward exactly.
    return fc_out + proj.reshape(B, 1, 1)


# ---------------------------------------------------------------------------
if __name__ == "__main__":
    B = 2
    key = jax.random.PRNGKey(0)
    kx, kc, kp = jax.random.split(key, 3)
    # spatial 32 is required so that three stride-2 convs land on w_g = 4
    x = jax.random.normal(kx, (B, CHANNELS, 32, 32), jnp.float32)
    labels = jax.random.randint(kc, (B,), 0, NUM_CLASSES)
    c = jax.nn.one_hot(labels, NUM_CLASSES, dtype=jnp.float32)

    params = init_params(kp)
    # SAGAN initializes gamma to 0 (attention is a no-op at init); use a nonzero gamma
    # here so the fused attention kernel actually contributes to the output being checked.
    wqkv_p, bqkv_p, n_qkv, _ = params["att"]
    params["att"] = (wqkv_p, bqkv_p, n_qkv, jnp.full((1, 1), 0.1, jnp.float32))

    out = discriminator_forward(params, x, c)
    out = jax.block_until_ready(out)
    assert out.shape == (B, B, 1), out.shape
    assert jnp.all(jnp.isfinite(out))
    print("KERNEL_OK")
</pallas_src>

<mosaic_0001>
module attributes {stable_mosaic.version = 11 : i64} {
  func.func @_matmul_bias_act_kernel(%arg0: i32, %arg1: i32, %arg2: i32, %arg3: memref<512x128xbf16, #tpu.memory_space<vmem>>, %arg4: memref<128x128xbf16, #tpu.memory_space<vmem>>, %arg5: memref<1x128xf32, #tpu.memory_space<vmem>>, %arg6: memref<512x128xbf16, #tpu.memory_space<vmem>>, %arg7: memref<512x128xf32, #tpu.memory_space<vmem>>) attributes {dimension_semantics = [#tpu.dimension_semantics<parallel>, #tpu.dimension_semantics<parallel>, #tpu.dimension_semantics<arbitrary>], iteration_bounds = array<i64: 4, 1, 1>, scalar_prefetch = 0 : i64, scratch_operands = 1 : i64, tpu.core_type = #tpu.core_type<tc>, window_params = [{transform_indices = @transform_0, window_bounds = array<i64: 512, 128>}, {transform_indices = @transform_1, window_bounds = array<i64: 128, 128>}, {transform_indices = @transform_2, window_bounds = array<i64: 1, 128>}, {transform_indices = @transform_3, window_bounds = array<i64: 512, 128>}]} {
    %c0_i32 = arith.constant 0 : i32
    %0 = arith.cmpi eq, %arg2, %c0_i32 : i32
    %1 = arith.extui %0 : i1 to i32
    %c0_i32_0 = arith.constant 0 : i32
    %2 = arith.cmpi ne, %1, %c0_i32_0 : i32
    scf.if %2 {
      %cst_10 = arith.constant 0.000000e+00 : f32
      %12 = vector.broadcast %cst_10 : f32 to vector<512x128xf32>
      %c0_11 = arith.constant 0 : index
      %c0_12 = arith.constant 0 : index
      %13 = vector.load %arg7[%c0_11, %c0_12] : memref<512x128xf32, #tpu.memory_space<vmem>>, vector<512x128xf32>
      tpu.vector_store %arg7[%c0_11, %c0_12], %12 {strides = array<i32>} : memref<512x128xf32, #tpu.memory_space<vmem>>, vector<512x128xf32>,
    } else {
    }
    %c0 = arith.constant 0 : index
    %c0_1 = arith.constant 0 : index
    %3 = vector.load %arg7[%c0, %c0_1] : memref<512x128xf32, #tpu.memory_space<vmem>>, vector<512x128xf32>
    %c0_2 = arith.constant 0 : index
    %c0_3 = arith.constant 0 : index
    %4 = vector.load %arg3[%c0_2, %c0_3] : memref<512x128xbf16, #tpu.memory_space<vmem>>, vector<512x128xbf16>
    %c0_4 = arith.constant 0 : index
    %c0_5 = arith.constant 0 : index
    %5 = vector.load %arg4[%c0_4, %c0_5] : memref<128x128xbf16, #tpu.memory_space<vmem>>, vector<128x128xbf16>
    %cst = arith.constant dense<0.000000e+00> : vector<512x128xf32>
    %6 = tpu.matmul %4, %5, %cst {dimension_numbers = #tpu.dot_dimension_numbers<[1], [0], [0], [1], [0, 0, 1, 1], [], []>} : vector<512x128xbf16>, vector<128x128xbf16>, vector<512x128xf32> -> vector<512x128xf32>
    %7 = arith.addf %3, %6 : vector<512x128xf32>
    %c0_6 = arith.constant 0 : index
    %c0_7 = arith.constant 0 : index
    %8 = vector.load %arg7[%c0_6, %c0_7] : memref<512x128xf32, #tpu.memory_space<vmem>>, vector<512x128xf32>
    tpu.vector_store %arg7[%c0_6, %c0_7], %7 {strides = array<i32>} : memref<512x128xf32, #tpu.memory_space<vmem>>, vector<512x128xf32>,
    %c0_i32_8 = arith.constant 0 : i32
    %9 = arith.cmpi eq, %arg2, %c0_i32_8 : i32
    %10 = arith.extui %9 : i1 to i32
    %c0_i32_9 = arith.constant 0 : i32
    %11 = arith.cmpi ne, %10, %c0_i32_9 : i32
    scf.if %11 {
      %c0_10 = arith.constant 0 : index
      %c0_11 = arith.constant 0 : index
      %12 = vector.load %arg7[%c0_10, %c0_11] : memref<512x128xf32, #tpu.memory_space<vmem>>, vector<512x128xf32>
      %c0_12 = arith.constant 0 : index
      %c0_13 = arith.constant 0 : index
      %13 = vector.load %arg5[%c0_12, %c0_13] : memref<1x128xf32, #tpu.memory_space<vmem>>, vector<1x128xf32>
      %14 = vector.broadcast %13 : vector<1x128xf32> to vector<512x128xf32>
      %15 = arith.addf %12, %14 : vector<512x128xf32>
      %cst_14 = arith.constant 0.000000e+00 : f32
      %16 = vector.broadcast %cst_14 : f32 to vector<512x128xf32>
      %17 = arith.cmpf oge, %15, %16 : vector<512x128xf32>
      %cst_15 = arith.constant 1.000000e-01 : f32
      %18 = vector.broadcast %cst_15 : f32 to vector<512x128xf32>
      %19 = arith.mulf %18, %15 : vector<512x128xf32>
      %20 = arith.select %17, %15, %19 : vector<512x128xi1>, vector<512x128xf32>
      %21 = arith.truncf %20 : vector<512x128xf32> to vector<512x128xbf16>
      %c0_16 = arith.constant 0 : index
      %c0_17 = arith.constant 0 : index
      %22 = vector.load %arg6[%c0_16, %c0_17] : memref<512x128xbf16, #tpu.memory_space<vmem>>, vector<512x128xbf16>
      tpu.vector_store %arg6[%c0_16, %c0_17], %21 {strides = array<i32>} : memref<512x128xbf16, #tpu.memory_space<vmem>>, vector<512x128xbf16>,
    } else {
    }
    return
  }
  func.func @transform_0(%arg0: i32, %arg1: i32, %arg2: i32) -> (i32, i32) {
    %c0_i32 = arith.constant 0 : i32
    return %arg0, %arg2 : i32, i32
  }
  func.func @transform_1(%arg0: i32, %arg1: i32, %arg2: i32) -> (i32, i32) {
    %c0_i32 = arith.constant 0 : i32
    return %arg2, %arg1 : i32, i32
  }
  func.func @transform_2(%arg0: i32, %arg1: i32, %arg2: i32) -> (i32, i32) {
    %c0_i32 = arith.constant 0 : i32
    %c0_i32_0 = arith.constant 0 : i32
    return %c0_i32, %arg1 : i32, i32
  }
  func.func @transform_3(%arg0: i32, %arg1: i32, %arg2: i32) -> (i32, i32) {
    %c0_i32 = arith.constant 0 : i32
    return %arg0, %arg1 : i32, i32
  }
}

</mosaic_0001>

<bundles_post_ra>
// kernel: tpu_custom_call.1
= control target key start
LH: loop header
LB: loop body
LE: loop exit
PB: predicated region body
PF: predicated region fallthrough
CT: control target
= control target key end

     0   :  { %8 = vsyncpa [#allocation4], 0  ;;  %s3086_s0 = inlined_call_operand.hbm [shape: bf16[2048,128], index: 0, kind: input, shape index: {}]   ;;  %s3087_s1 = inlined_call_operand.hbm [shape: bf16[128,128], index: 1, kind: input, shape index: {}]   ;;  %s3088_s2 = inlined_call_operand.vmem [shape: f32[1,128], index: 2, kind: input, shape index: {}]   ;;  %s3089_s3 = inlined_call_operand.hbm [shape: bf16[2048,128], index: 3, kind: output, shape index: {}]  }
   0x1   :  { %10 = vsyncpa [#allocation4 + $0x1], 0 }
   0x2   :  { %11 = vsyncpa [#allocation7], 0 }
   0x3   :  { %12 = vsyncpa [#allocation5], 0 }
   0x4   :  { %14 = vsyncpa [#allocation5 + $0x1], 0  ;;  %s2711_s12 = smov 0   ;;  %s2713_s13 = smov 0  }
   0x5   :  { %s2715_s14 = smov 0   ;;  %s2717_s15 = smov 0  }
   0x6   :  { %s2719_s16 = smov 0   ;;  %s2721_s17 = smov 0  }
   0x7 LB: > { %s1905_s18 = sadd.s32 4294967295, %s2682_s17   ;;  %s1906_s19 = sadd.s32 4294967294, %s2682_s17   ;;  %s2682_s17 = sphi %s2721_s17, %s20_s17   ;;  %s2678_s16 = sphi %s2719_s16, %s3112_s16   ;;  %s2674_s15 = sphi %s2717_s15, %s3111_s15   ;;  %s2670_s14 = sphi %s2715_s14, %s3110_s14   ;;  %s2666_s13 = sphi %s2713_s13, %s3109_s13   ;;  %s2662_s12 = sphi %s2711_s12, %s3108_s12  }
   0x8   : > { %p61_p0 = scmp.ne.s32.totalorder %s2666_s13, %s2662_s12  ;;  %p2745_p1 = scmp.eq.s32.totalorder %s1905_s18, 0 }
   0x9   : > { %p2749_p2 = scmp.eq.s32.totalorder %s1905_s18, 3  ;;  %p147_p3 = scmp.eq.s32.totalorder %s1906_s19, 3 }
   0xa   : > { %s3094_s20 = scalar_select %p2745_p1, 1, 0 }
   0xb   : > { %s3095_s21 = scalar_select %p2749_p2, 1, 0 }
   0xc   : > { %p2755_p4 = por %p2745_p1, %p61_p0  ;;  %p1907_p5 = scmp.ge.s32.totalorder %s2682_s17, 1 }
   0xd   : > { %p2760_p6 = por %p147_p3, %p61_p0  ;;  %p154_p7 = scmp.lt.s32.totalorder %s2682_s17, 5 }
   0xe   : > { %s3096_s22 = scalar_select %p2755_p4, 1, 0 }
   0xf   : > { %s3097_s23 = scalar_select %p2760_p6, 1, 0 }
  0x10   : > { %p2765_p8 = pnand %p1907_p5, %p154_p7  ;;  %s2684_s25 = smov [#allocation6]  }
  0x11   : > { %s170_s26 = sshll.u32 %s2684_s25, 4  ;;  %s39_s28 = sadd.s32 1, %s2678_s16  ;;  %s171_s26 = int_to_ptr.vmem [resolvable:$true] %s170_s26 }
  0x12   : > { %s3098_s24 = scalar_select %p2765_p8, 1, 0 }
  0x13   : > { %p2429_p9 = pneg %p2765_p8  ;;  %s2538_s4 = scalar_lea.hbm %s3087_s1, 1024 }
  0x14   : > { %p2539_p11 = scmp.ne.s32.totalorder %s3087_s1, %s2538_s4  ;;  %p2545_p3 = scmp.lt.u32.totalorder %s2538_s4, %s3087_s1 }
  0x15   : > { %p2773_p10 = pnand %p2429_p9, %p2745_p1 }
  0x17   : > { %p2540_p12 = pneg %p2773_p10 }
  0x19   : > { %p2541_p13 = pnand %p2540_p12, %p2539_p11 }
  0x1b   : > { %p2542_p0 = pneg %p2541_p13 }
  0x1d   : > { %p2547_p5 = pnand %p2545_p3, %p2542_p0 }
  0x1f   : > { %2550 = shalt.err (!%p2547_p5)
}
  0x20   : > { %s2551_s9 = scalar_lea.vmem %s171_s26, 1024  ;;  %p2559_p1 = scmp.lt.s32.totalorder %s171_s26, %s171_s26 }
  0x21   : > { %p2552_p7 = scmp.ne.s32.totalorder %s171_s26, %s2551_s9  ;;  %p2560_p4 = scmp.lt.s32.totalorder %s2551_s9, %s2551_s9 }
  0x23   : > { %p2554_p9 = pnand %p2552_p7, %p2540_p12  ;;  %p2561_p8 = por %p2560_p4, %p2559_p1 }
  0x25   : > { %p2555_p6 = pneg %p2554_p9 }
  0x27   : > { %p2562_p2 = pnand %p2561_p8, %p2555_p6 }
  0x29   : > { %2565 = shalt.err (!%p2562_p2)
}
  0x2a   : > { %s2685_s10 = smov 64   ;;  %s2686_s11 = smov 4  }
  0x2b   : > { %2432 = dma.hbm_to_vmem [thread:$0]  (!%p2773_p10), %s3087_s1, 1024, %s171_s26, [#allocation7], %s2685_s10, %s2685_s10, %s2686_s11  }
  0x2c   : > { %p41_p1 = scmp.ge.s32.totalorder %s39_s28, 4  ;;  %s48_s25 = sadd.s32 1, %s2670_s14 }
  0x2d   : > { %p55_p2 = scmp.ne.s32.totalorder %s2670_s14, %s2666_s13  ;;  %p56_p4 = scmp.eq.s32.totalorder %s2682_s17, 0 }
  0x2e   : > { %s3114_s28 = smov (%p41_p1, %s39_s28), 0  ;;  %p3101_p8 = scmp.ne.s32.totalorder %s3095_s21, 0 }
  0x2f   : > { %p2803_p6 = por %p56_p4, %p55_p2  ;;  %s43_s30 = ssub.s32 %s2678_s16, %s3114_s28 }
  0x30   : > { %p2809_p11 = por %p3101_p8, %p55_p2  ;;  %p2442_p12 = scmp.lt.s32.totalorder %s2682_s17, 4 }
  0x31   : > { %p46_p10 = scmp.eq.s32.totalorder %s43_s30, 0  ;;  %s190_s26 = sand.u32 1, %s2670_s14  }
  0x32   : > { %s1911_s4 = sshll.u32 %s190_s26, 8  ;;  %s2028_s6 = sshll.u32 %s2678_s16, 12 }
  0x33   : > { %s2818_s5 = scalar_select %p46_p10, %s2670_s14, %s48_s25  }
  0x34   : > { %s2824_s9 = scalar_lea.hbm %s3086_s0, %s2028_s6  ;;  %s194_s21 = scalar_lea.vmem [#allocation3], %s1911_s4 }
  0x35   : > { %s202_s18 = sshll.u32 %s194_s21, 4  ;;  %p2830_p13 = pnand %p2442_p12, %p2803_p6  ;;  %s2826_s18 = int_to_ptr.vmem [resolvable:$true] %s202_s18 }
  0x36   : > { %s2834_s25 = scalar_lea.sflag [#allocation4], %s190_s26  ;;  %s2566_s30 = scalar_lea.hbm %s2824_s9, 4096 }
  0x37   : > { %p2567_p0 = scmp.ne.s32.totalorder %s2824_s9, %s2566_s30  ;;  %p2568_p3 = pneg %p2830_p13 }
  0x38   : > { %s2571_s29 = scalar_lea.hbm %s3086_s0, 16384  ;;  %p2572_p9 = scmp.lt.u32.totalorder %s2824_s9, %s3086_s0 }
  0x39   : > { %p2569_p5 = pnand %p2568_p3, %p2567_p0  ;;  %p2573_p1 = scmp.lt.u32.totalorder %s2571_s29, %s2566_s30 }
  0x3a   : > { %p2575_p4 = scmp.lt.u32.totalorder %s2566_s30, %s2824_s9 }
  0x3b   : > { %p2570_p7 = pneg %p2569_p5  ;;  %p2574_p2 = por %p2573_p1, %p2572_p9 }
  0x3d   : > { %p2576_p6 = por %p2575_p4, %p2574_p2 }
  0x3f   : > { %p2577_p8 = pnand %p2576_p6, %p2570_p7 }
  0x41   : > { %2580 = shalt.err (!%p2577_p8)
}
  0x42   : > { %s2581_s26 = scalar_lea.vmem %s2826_s18, 4096  ;;  %s2687_s21 = smov [#allocation3]  }
  0x43   : > { %p2582_p12 = scmp.ne.s32.totalorder %s2826_s18, %s2581_s26  ;;  %s2586_s4 = sshll.u32 %s2687_s21, 4  ;;  %s2587_s4 = int_to_ptr.vmem [resolvable:$false] %s2586_s4 }
  0x44   : > { %s2588_s6 = scalar_lea.vmem %s2587_s4, 8192  ;;  %p2589_p5 = scmp.lt.s32.totalorder %s2826_s18, %s2587_s4 }
  0x45   : > { %p2584_p10 = pnand %p2582_p12, %p2568_p3  ;;  %p2590_p9 = scmp.lt.s32.totalorder %s2588_s6, %s2581_s26 }
  0x47   : > { %p2585_p0 = pneg %p2584_p10  ;;  %p2591_p1 = por %p2590_p9, %p2589_p5 }
  0x49   : > { %p2592_p2 = pnand %p2591_p1, %p2585_p0 }
  0x4b   : > { %2595 = shalt.err (!%p2592_p2)
}
  0x4c   : > { %2436 = dma.hbm_to_vmem [thread:$0]  (!%p2830_p13), %s2824_s9, 4096, %s2826_s18, %s2834_s25, %s2685_s10, %s2685_s10, %s2686_s11  }
  0x4d   : > { %p3104_p3 = scmp.ne.s32.totalorder %s3098_s24, 0 }
  0x4e   : > { %s2868_s30 = sand.u32 (!%p3104_p3), 1, %s2666_s13   ;;  %p3105_p7 = scmp.ne.s32.totalorder (!%p3104_p3), %s3096_s22, 0 }
  0x4f   : > { %214 = sbr.rel (%p3104_p3) target bundleno = 426 (0x1aa), region = 32  ;;  %s1915_s29 = sshll.u32 (!%p3104_p3), %s2868_s30, 8 }
  0x50   : > { %s217_s7 = scalar_lea.sflag (!%p3104_p3), [#allocation4], %s2868_s30  ;;  %s2874_s19 = scalar_lea.vmem (!%p3104_p3), [#allocation3], %s1915_s29 }
  0x56   : > { %2649 = dma.done.wait (%p3105_p7), %s217_s7, 4096  }
  0x57   : > { %2651 = vsyncadd (%p3105_p7), %s217_s7, 4294963200  ;;  %p3106_p13 = scmp.ne.s32.totalorder %s3094_s20, 0 }
  0x59   : > { %2653 = dma.done.wait (%p3106_p13), [#allocation7], 1024  }
  0x5a   : > { %2655 = vsyncadd (%p3106_p13), [#allocation7], 4294966272  ;;  %v2498_v0 = vld [vmem:[#allocation6] sm:$0xff]   ;;  %v2499_v1 = vld [vmem:[#allocation6 + $0x8] sm:$0xff]   ;;  %s2935_s24 = scalar_lea.vmem [#allocation8], %s1915_s29  ;;  %s2093_s10 = sshll.u32 %s2674_s15, 12 }
  0x5b   : > { %2325 = vmatprep.subr.bf16.mxu0 %v2498_v0  ;;  %2405 = vmatprep.subr.bf16.mxu1 %v2498_v0  ;;  %v2500_v2 = vld [vmem:[#allocation6 + $0x10] sm:$0xff]   ;;  %v2501_v3 = vld [vmem:[#allocation6 + $0x18] sm:$0xff]   ;;  %v2506_v4 = vld [vmem:[%s2874_s19] sm:$0xff]   ;;  %s1791_s11 = sshll.u32 %s2935_s24, 4  ;;  %s3032_s18 = scalar_lea.hbm %s3089_s3, %s2093_s10  ;;  %s3034_s11 = int_to_ptr.vmem [resolvable:$true] %s1791_s11 }
  0x5c   : > { %2326 = vmatpush3.bf16.msra.mxu0 %v2498_v0  ;;  %2413 = vmatpush3.bf16.msra.mxu1 %v2498_v0  ;;  %v2507_v5 = vld [vmem:[%s2874_s19 + $0x80] sm:$0xff]   ;;  %v2503_v7 = vld [vmem:[#allocation6 + $0x28] sm:$0xff]   ;;  %v2504_v8 = vld [vmem:[#allocation6 + $0x30] sm:$0xff]   ;;  %s1777_s25 = scalar_lea.sflag [#allocation5], %s2868_s30  ;;  %s2596_s8 = scalar_lea.vmem %s3034_s11, 4096 }
  0x5d   : > { %2327 = vmatprep.subr.bf16.mxu0 %v2499_v1  ;;  %2406 = vmatprep.subr.bf16.mxu1 %v2499_v1  ;;  %v2502_v6 = vld [vmem:[#allocation6 + $0x20] sm:$0xff]   ;;  %v2505_v9 = vld [vmem:[#allocation6 + $0x38] sm:$0xff]   ;;  %v2508_v10 = vld [vmem:[%s2874_s19 + $0x8] sm:$0xff]   ;;  %p2597_p4 = scmp.ne.s32.totalorder %s3034_s11, %s2596_s8  ;;  %s2688_s26 = smov [#allocation8]  }
  0x5e   : > { %2341 = vmatprep.mubr.bf16.mxu0 %v2506_v4  ;;  %2373 = vmatprep.mubr.bf16.mxu1 %v2507_v5  ;;  %v2509_v11 = vld [vmem:[%s2874_s19 + $0x88] sm:$0xff]   ;;  %v2510_v12 = vld [vmem:[%s2874_s19 + $0x10] sm:$0xff]   ;;  %v2512_v14 = vld [vmem:[%s2874_s19 + $0x18] sm:$0xff]   ;;  %s2600_s21 = sshll.u32 %s2688_s26, 4  ;;  %s2601_s21 = int_to_ptr.vmem [resolvable:$false] %s2600_s21 }
  0x5f   : > { %v2511_v13 = vld [vmem:[%s2874_s19 + $0x90] sm:$0xff]   ;;  %v2513_v15 = vld [vmem:[%s2874_s19 + $0x98] sm:$0xff]   ;;  %v2514_v16 = vld [vmem:[%s2874_s19 + $0x20] sm:$0xff]   ;;  %p2598_p6 = pnand %p2597_p4, %p2809_p11  ;;  %s2602_s4 = scalar_lea.vmem %s2601_s21, 8192 }
  0x60   : > { %2328 = vmatpush3.bf16.msra.mxu0 %v2499_v1  ;;  %2414 = vmatpush3.bf16.msra.mxu1 %v2499_v1  ;;  %v2515_v17 = vld [vmem:[%s2874_s19 + $0xa0] sm:$0xff]   ;;  %v2516_v18 = vld [vmem:[%s2874_s19 + $0x28] sm:$0xff]   ;;  %v2518_v20 = vld [vmem:[%s2874_s19 + $0x30] sm:$0xff]   ;;  %p2603_p12 = scmp.lt.s32.totalorder %s3034_s11, %s2601_s21  ;;  %p2604_p10 = scmp.lt.s32.totalorder %s2602_s4, %s2596_s8 }
  0x61   : > { %2329 = vmatprep.subr.bf16.mxu0 %v2500_v2  ;;  %2407 = vmatprep.subr.bf16.mxu1 %v2500_v2  ;;  %v2517_v19 = vld [vmem:[%s2874_s19 + $0xa8] sm:$0xff]   ;;  %v2519_v21 = vld [vmem:[%s2874_s19 + $0xb0] sm:$0xff]   ;;  %v2520_v22 = vld [vmem:[%s2874_s19 + $0x38] sm:$0xff]   ;;  %p2599_p8 = pneg %p2598_p6 }
  0x62   : > { %v2521_v23 = vld [vmem:[%s2874_s19 + $0xb8] sm:$0xff]   ;;  %v2522_v24 = vld [vmem:[%s2874_s19 + $0x40] sm:$0xff]   ;;  %v2524_v26 = vld [vmem:[%s2874_s19 + $0x48] sm:$0xff]   ;;  %p2605_p0 = por %p2604_p10, %p2603_p12 }
  0x63   : > { %v2523_v25 = vld [vmem:[%s2874_s19 + $0xc0] sm:$0xff]   ;;  %v2525_v27 = vld [vmem:[%s2874_s19 + $0xc8] sm:$0xff]   ;;  %v2526_v28 = vld [vmem:[%s2874_s19 + $0x50] sm:$0xff]  }
  0x64   : > { %2330 = vmatpush3.bf16.msra.mxu0 %v2500_v2  ;;  %2415 = vmatpush3.bf16.msra.mxu1 %v2500_v2  ;;  %v2527_v29 = vld [vmem:[%s2874_s19 + $0xd0] sm:$0xff]   ;;  %v2528_v30 = vld [vmem:[%s2874_s19 + $0x58] sm:$0xff]   ;;  %v2530_v32 = vld [vmem:[%s2874_s19 + $0x60] sm:$0xff]   ;;  %p2606_p5 = pnand %p2605_p0, %p2599_p8 }
  0x65   : > { %2331 = vmatprep.subr.bf16.mxu0 %v2501_v3  ;;  %2408 = vmatprep.subr.bf16.mxu1 %v2501_v3  ;;  %v2529_v31 = vld [vmem:[%s2874_s19 + $0xd8] sm:$0xff]   ;;  %v2531_v33 = vld [vmem:[%s2874_s19 + $0xe0] sm:$0xff]   ;;  %v2532_v34 = vld [vmem:[%s2874_s19 + $0x68] sm:$0xff]  }
  0x66   : > { %v2533_v35 = vld [vmem:[%s2874_s19 + $0xe8] sm:$0xff]   ;;  %v2534_v36 = vld [vmem:[%s2874_s19 + $0x70] sm:$0xff]   ;;  %v2536_v38 = vld [vmem:[%s2874_s19 + $0x78] sm:$0xff]  }
  0x67   : > { %v2535_v37 = vld [vmem:[%s2874_s19 + $0xf0] sm:$0xff]   ;;  %v2537_v39 = vld [vmem:[%s2874_s19 + $0xf8] sm:$0xff]   ;;  %v2919_v40 = vld [vmem:[%s3088_s2] ss:$0 sm:$0xff] }
  0x68   : > { %2332 = vmatpush3.bf16.msra.mxu0 %v2501_v3  ;;  %2416 = vmatpush3.bf16.msra.mxu1 %v2501_v3 }
  0x69   : > { %2333 = vmatprep.subr.bf16.mxu0 %v2502_v6  ;;  %2409 = vmatprep.subr.bf16.mxu1 %v2502_v6 }
  0x6c   : > { %2334 = vmatpush3.bf16.msra.mxu0 %v2502_v6  ;;  %2417 = vmatpush3.bf16.msra.mxu1 %v2502_v6 }
  0x6d   : > { %2335 = vmatprep.subr.bf16.mxu0 %v2503_v7  ;;  %2410 = vmatprep.subr.bf16.mxu1 %v2503_v7 }
  0x70   : > { %2336 = vmatpush3.bf16.msra.mxu0 %v2503_v7  ;;  %2418 = vmatpush3.bf16.msra.mxu1 %v2503_v7 }
  0x71   : > { %2337 = vmatprep.subr.bf16.mxu0 %v2504_v8  ;;  %2411 = vmatprep.subr.bf16.mxu1 %v2504_v8 }
  0x74   : > { %2338 = vmatpush3.bf16.msra.mxu0 %v2504_v8  ;;  %2419 = vmatpush3.bf16.msra.mxu1 %v2504_v8 }
  0x75   : > { %2339 = vmatprep.subr.bf16.mxu0 %v2505_v9  ;;  %2412 = vmatprep.subr.bf16.mxu1 %v2505_v9 }
  0x78   : > { %2340 = vmatpush3.bf16.msra.mxu0 %v2505_v9  ;;  %2420 = vmatpush3.bf16.msra.mxu1 %v2505_v9 }
  0x7b   : > { %2342 = vmatmul.mubr.bf16.vlgmr.msra.gmra.mrb[0].mxu0 %v2508_v10  ;;  %2374 = vmatmul.mubr.bf16.vlgmr.msra.gmra.mrb[0].mxu1 %v2509_v11 }
  0x7c   : > { %2345 = vmatprep.mubr.bf16.mxu0 %v2510_v12  ;;  %2377 = vmatprep.mubr.bf16.mxu1 %v2511_v13 }
  0x83   : > { %2346 = vmatmul.mubr.bf16.gmra.mrb[4].mxu0 %v2512_v14  ;;  %2378 = vmatmul.mubr.bf16.gmra.mrb[4].mxu1 %v2513_v15 }
  0x84   : > { %2349 = vmatprep.mubr.bf16.mxu0 %v2514_v16  ;;  %2381 = vmatprep.mubr.bf16.mxu1 %v2515_v17 }
  0x8b   : > { %2350 = vmatmul.mubr.bf16.gmra.mrb[8].mxu0 %v2516_v18  ;;  %2382 = vmatmul.mubr.bf16.gmra.mrb[8].mxu1 %v2517_v19 }
  0x8c   : > { %2353 = vmatprep.mubr.bf16.mxu0 %v2518_v20  ;;  %2385 = vmatprep.mubr.bf16.mxu1 %v2519_v21 }
  0x93   : > { %2354 = vmatmul.mubr.bf16.gmra.mrb[12].mxu0 %v2520_v22  ;;  %2386 = vmatmul.mubr.bf16.gmra.mrb[12].mxu1 %v2521_v23 }
  0x94   : > { %2357 = vmatprep.mubr.bf16.mxu0 %v2522_v24  ;;  %2389 = vmatprep.mubr.bf16.mxu1 %v2523_v25 }
  0x9b   : > { %2358 = vmatmul.mubr.bf16.gmra.mrb[16].mxu0 %v2524_v26  ;;  %2390 = vmatmul.mubr.bf16.gmra.mrb[16].mxu1 %v2525_v27 }
  0x9c   : > { %2361 = vmatprep.mubr.bf16.mxu0 %v2526_v28  ;;  %2393 = vmatprep.mubr.bf16.mxu1 %v2527_v29 }
  0xa3   : > { %2362 = vmatmul.mubr.bf16.gmra.mrb[20].mxu0 %v2528_v30  ;;  %2394 = vmatmul.mubr.bf16.gmra.mrb[20].mxu1 %v2529_v31 }
  0xa4   : > { %2365 = vmatprep.mubr.bf16.mxu0 %v2530_v32  ;;  %2397 = vmatprep.mubr.bf16.mxu1 %v2531_v33 }
  0xab   : > { %2366 = vmatmul.mubr.bf16.gmra.mrb[24].mxu0 %v2532_v34  ;;  %2398 = vmatmul.mubr.bf16.gmra.mrb[24].mxu1 %v2533_v35 }
  0xac   : > { %2369 = vmatprep.mubr.bf16.mxu0 %v2534_v36  ;;  %2401 = vmatprep.mubr.bf16.mxu1 %v2535_v37 }
  0xb3   : > { %2370 = vmatmul.mubr.bf16.gmra.mrb[28].mxu0 %v2536_v38  ;;  %2402 = vmatmul.mubr.bf16.gmra.mrb[28].mxu1 %v2537_v39 }
 0x14e   : > { %v2343_v41 = vpop.f32.mrb[0].mxu0  ;;  %v2375_v42 = vpop.f32.mrb[0].mxu1 }
 0x14f   : > { %v1202_v43 = vadd.f32 %v2343_v41, %v2919_v40  ;;  %v1234_v44 = vadd.f32 %v2375_v42, %v2919_v40  ;;  %v743_v45 = vpop.f32.mrb[1].mxu0  ;;  %v871_v46 = vpop.f32.mrb[1].mxu1 }
 0x150   : > { %v1200_v47 = vadd.f32 %v2919_v40, %v743_v45  ;;  %v1232_v48 = vadd.f32 %v2919_v40, %v871_v46  ;;  %v2344_v49 = vpop.f32.mrb[2].mxu0  ;;  %v2376_v50 = vpop.f32.mrb[2].mxu1 }
 0x151   : > { %vm1266_vm0 = vcmp.ge.f32.partialorder %v1202_v43, 0.0  ;;  %v1330_v51 = vmul.f32 0.1, %v1202_v43  ;;  %vm1298_vm1 = vcmp.ge.f32.partialorder %v1234_v44, 0.0  ;;  %v1362_v52 = vmul.f32 0.1, %v1234_v44 }
 0x152   : > { %vm1264_vm2 = vcmp.ge.f32.partialorder %v1200_v47, 0.0  ;;  %v1328_v53 = vmul.f32 0.1, %v1200_v47  ;;  %vm1296_vm3 = vcmp.ge.f32.partialorder %v1232_v48, 0.0  ;;  %v1360_v54 = vmul.f32 0.1, %v1232_v48 }
 0x153   : > { %v1203_v55 = vadd.f32 %v2344_v49, %v2919_v40  ;;  %v1235_v56 = vadd.f32 %v2376_v50, %v2919_v40  ;;  %v746_v57 = vpop.f32.mrb[3].mxu0  ;;  %v874_v58 = vpop.f32.mrb[3].mxu1  ;;  %v1394_v59 = vsel %vm1266_vm0, %v1202_v43, %v1330_v51  ;;  %v1426_v60 = vsel %vm1298_vm1, %v1234_v44, %v1362_v52 }
 0x154   : > { %v1201_v61 = vadd.f32 %v2919_v40, %v746_v57  ;;  %v1233_v62 = vadd.f32 %v2919_v40, %v874_v58  ;;  %v1392_v3 = vsel %vm1264_vm2, %v1200_v47, %v1328_v53  ;;  %v1424_v4 = vsel %vm1296_vm3, %v1232_v48, %v1360_v54 }
 0x155   : > { %vm1267_vm4 = vcmp.ge.f32.partialorder %v1203_v55, 0.0  ;;  %v1331_v63 = vmul.f32 0.1, %v1203_v55  ;;  %vm1299_vm5 = vcmp.ge.f32.partialorder %v1235_v56, 0.0  ;;  %v1363_v0 = vmul.f32 0.1, %v1235_v56 }
 0x156   : > { %vm1265_vm6 = vcmp.ge.f32.partialorder %v1201_v61, 0.0  ;;  %v1329_v1 = vmul.f32 0.1, %v1201_v61  ;;  %vm1297_vm7 = vcmp.ge.f32.partialorder %v1233_v62, 0.0  ;;  %v1361_v2 = vmul.f32 0.1, %v1233_v62 }
 0x157   : > { %v1395_v5 = vsel %vm1267_vm4, %v1203_v55, %v1331_v63  ;;  %v1427_v6 = vsel %vm1299_vm5, %v1235_v56, %v1363_v0  ;;  %v2347_v7 = vpop.f32.mrb[4].mxu0  ;;  %v2379_v8 = vpop.f32.mrb[4].mxu1 }
 0x158   : > { %v2102_v9 = vpack.c.bf16 %v1395_v5, %v1394_v59  ;;  %v2182_v10 = vpack.c.bf16 %v1427_v6, %v1426_v60  ;;  %v1393_v11 = vsel %vm1265_vm6, %v1201_v61, %v1329_v1  ;;  %v1425_v12 = vsel %vm1297_vm7, %v1233_v62, %v1361_v2  ;;  %v759_v13 = vpop.f32.mrb[5].mxu0  ;;  %v887_v14 = vpop.f32.mrb[5].mxu1 }
 0x159   : > { %v2097_v15 = vpack.c.bf16 %v1393_v11, %v1392_v3  ;;  %v2177_v16 = vpack.c.bf16 %v1425_v12, %v1424_v4  ;;  %v1206_v17 = vadd.f32 %v2347_v7, %v2919_v40  ;;  %v1238_v18 = vadd.f32 %v2379_v8, %v2919_v40  ;;  %v2348_v19 = vpop.f32.mrb[6].mxu0  ;;  %v2380_v20 = vpop.f32.mrb[6].mxu1 }
 0x15a   : > { %2254 = vst [vmem:[%s2935_s24 + $0x8] sm:$0xff] %v2102_v9   ;;  %2270 = vst [vmem:[%s2935_s24 + $0x88] sm:$0xff] %v2182_v10   ;;  %v1204_v21 = vadd.f32 %v2919_v40, %v759_v13  ;;  %v1236_v22 = vadd.f32 %v2919_v40, %v887_v14  ;;  %v1207_v23 = vadd.f32 %v2348_v19, %v2919_v40  ;;  %v762_v25 = vpop.f32.mrb[7].mxu0  ;;  %v890_v26 = vpop.f32.mrb[7].mxu1 }
 0x15b   : > { %v1239_v24 = vadd.f32 %v2380_v20, %v2919_v40  ;;  %2098 = vst [vmem:[%s2935_s24] sm:$0xff] %v2097_v15   ;;  %2269 = vst [vmem:[%s2935_s24 + $0x80] sm:$0xff] %v2177_v16   ;;  %vm1270_vm8 = vcmp.ge.f32.partialorder %v1206_v17, 0.0  ;;  %v1334_v27 = vmul.f32 0.1, %v1206_v17  ;;  %vm1302_vm9 = vcmp.ge.f32.partialorder %v1238_v18, 0.0 }
 0x15c   : > { %v1366_v28 = vmul.f32 0.1, %v1238_v18  ;;  %vm1268_vm10 = vcmp.ge.f32.partialorder %v1204_v21, 0.0  ;;  %v1332_v29 = vmul.f32 0.1, %v1204_v21  ;;  %vm1300_vm11 = vcmp.ge.f32.partialorder %v1236_v22, 0.0 }
 0x15d   : > { %v1364_v30 = vmul.f32 0.1, %v1236_v22  ;;  %v1398_v31 = vsel %vm1270_vm8, %v1206_v17, %v1334_v27  ;;  %vm1271_vm12 = vcmp.ge.f32.partialorder %v1207_v23, 0.0  ;;  %v1335_v33 = vmul.f32 0.1, %v1207_v23 }
 0x15e   : > { %v1430_v32 = vsel %vm1302_vm9, %v1238_v18, %v1366_v28  ;;  %v1396_v34 = vsel %vm1268_vm10, %v1204_v21, %v1332_v29  ;;  %vm1303_vm13 = vcmp.ge.f32.partialorder %v1239_v24, 0.0  ;;  %v1367_v36 = vmul.f32 0.1, %v1239_v24  ;;  %v2351_v37 = vpop.f32.mrb[8].mxu0  ;;  %v2383_v38 = vpop.f32.mrb[8].mxu1 }
 0x15f   : > { %v1428_v35 = vsel %vm1300_vm11, %v1236_v22, %v1364_v30  ;;  %v1399_v39 = vsel %vm1271_vm12, %v1207_v23, %v1335_v33  ;;  %v1205_v41 = vadd.f32 %v2919_v40, %v762_v25  ;;  %v1237_v42 = vadd.f32 %v2919_v40, %v890_v26  ;;  %v775_v44 = vpop.f32.mrb[9].mxu0  ;;  %v903_v45 = vpop.f32.mrb[9].mxu1 }
 0x160   : > { %v1210_v43 = vadd.f32 %v2351_v37, %v2919_v40  ;;  %v2112_v46 = vpack.c.bf16 %v1399_v39, %v1398_v31  ;;  %v1431_v47 = vsel %vm1303_vm13, %v1239_v24, %v1367_v36  ;;  %v1242_v48 = vadd.f32 %v2383_v38, %v2919_v40  ;;  %v2352_v50 = vpop.f32.mrb[10].mxu0  ;;  %v2384_v51 = vpop.f32.mrb[10].mxu1 }
 0x161   : > { %v1208_v49 = vadd.f32 %v2919_v40, %v775_v44  ;;  %v2192_v52 = vpack.c.bf16 %v1431_v47, %v1430_v32  ;;  %vm1269_vm14 = vcmp.ge.f32.partialorder %v1205_v41, 0.0  ;;  %v1333_v53 = vmul.f32 0.1, %v1205_v41  ;;  %v778_v54 = vpop.f32.mrb[11].mxu0  ;;  %v906_v55 = vpop.f32.mrb[11].mxu1 }
 0x162   : > { %vm1301_vm15 = vcmp.ge.f32.partialorder %v1237_v42, 0.0  ;;  %2256 = vst [vmem:[%s2935_s24 + $0x18] sm:$0xff] %v2112_v46   ;;  %v1365_v56 = vmul.f32 0.1, %v1237_v42  ;;  %vm1274_vm0 = vcmp.ge.f32.partialorder %v1210_v43, 0.0  ;;  %vm1306_vm1 = vcmp.ge.f32.partialorder %v1242_v48, 0.0 }
 0x163   : > { %v1338_v57 = vmul.f32 0.1, %v1210_v43  ;;  %2272 = vst [vmem:[%s2935_s24 + $0x98] sm:$0xff] %v2192_v52   ;;  %v1397_v58 = vsel %vm1269_vm14, %v1205_v41, %v1333_v53  ;;  %v1370_v59 = vmul.f32 0.1, %v1242_v48  ;;  %vm1272_vm2 = vcmp.ge.f32.partialorder %v1208_v49, 0.0 }
 0x164   : > { %v1336_v60 = vmul.f32 0.1, %v1208_v49  ;;  %v2107_v61 = vpack.c.bf16 %v1397_v58, %v1396_v34  ;;  %v1429_v62 = vsel %vm1301_vm15, %v1237_v42, %v1365_v56  ;;  %v1240_v0 = vadd.f32 %v2919_v40, %v903_v45 }
 0x165   : > { %v1402_v63 = vsel %vm1274_vm0, %v1210_v43, %v1338_v57  ;;  %v2187_v1 = vpack.c.bf16 %v1429_v62, %v1428_v35  ;;  %v1434_v2 = vsel %vm1306_vm1, %v1242_v48, %v1370_v59  ;;  %v1211_v4 = vadd.f32 %v2352_v50, %v2919_v40 }
 0x166   : > { %v1400_v3 = vsel %vm1272_vm2, %v1208_v49, %v1336_v60  ;;  %2255 = vst [vmem:[%s2935_s24 + $0x10] sm:$0xff] %v2107_v61   ;;  %vm1304_vm3 = vcmp.ge.f32.partialorder %v1240_v0, 0.0  ;;  %v1368_v5 = vmul.f32 0.1, %v1240_v0  ;;  %v1243_v6 = vadd.f32 %v2384_v51, %v2919_v40  ;;  %v2355_v8 = vpop.f32.mrb[12].mxu0  ;;  %v2387_v9 = vpop.f32.mrb[12].mxu1 }
 0x167   : > { %v1209_v7 = vadd.f32 %v2919_v40, %v778_v54  ;;  %2271 = vst [vmem:[%s2935_s24 + $0x90] sm:$0xff] %v2187_v1   ;;  %vm1275_vm4 = vcmp.ge.f32.partialorder %v1211_v4, 0.0  ;;  %v1339_v10 = vmul.f32 0.1, %v1211_v4  ;;  %v1241_v11 = vadd.f32 %v2919_v40, %v906_v55  ;;  %v791_v13 = vpop.f32.mrb[13].mxu0  ;;  %v919_v14 = vpop.f32.mrb[13].mxu1 }
 0x168   : > { %v1214_v12 = vadd.f32 %v2355_v8, %v2919_v40  ;;  %v1432_v15 = vsel %vm1304_vm3, %v1240_v0, %v1368_v5  ;;  %vm1307_vm5 = vcmp.ge.f32.partialorder %v1243_v6, 0.0  ;;  %v1371_v16 = vmul.f32 0.1, %v1243_v6  ;;  %v2356_v17 = vpop.f32.mrb[14].mxu0  ;;  %v2388_v18 = vpop.f32.mrb[14].mxu1 }
 0x169   : > { %vm1273_vm6 = vcmp.ge.f32.partialorder %v1209_v7, 0.0  ;;  %v1403_v19 = vsel %vm1275_vm4, %v1211_v4, %v1339_v10  ;;  %v1337_v20 = vmul.f32 0.1, %v1209_v7  ;;  %vm1305_vm7 = vcmp.ge.f32.partialorder %v1241_v11, 0.0  ;;  %v794_v22 = vpop.f32.mrb[15].mxu0  ;;  %v922_v26 = vpop.f32.mrb[15].mxu1 }
 0x16a   : > { %v1369_v21 = vmul.f32 0.1, %v1241_v11  ;;  %v2122_v23 = vpack.c.bf16 %v1403_v19, %v1402_v63  ;;  %v1435_v24 = vsel %vm1307_vm5, %v1243_v6, %v1371_v16  ;;  %vm1278_vm8 = vcmp.ge.f32.partialorder %v1214_v12, 0.0 }
 0x16b   : > { %v1342_v25 = vmul.f32 0.1, %v1214_v12  ;;  %v2202_v27 = vpack.c.bf16 %v1435_v24, %v1434_v2  ;;  %v1401_v28 = vsel %vm1273_vm6, %v1209_v7, %v1337_v20  ;;  %v1246_v30 = vadd.f32 %v2387_v9, %v2919_v40 }
 0x16c   : > { %v1433_v29 = vsel %vm1305_vm7, %v1241_v11, %v1369_v21  ;;  %2258 = vst [vmem:[%s2935_s24 + $0x28] sm:$0xff] %v2122_v23   ;;  %v2117_v31 = vpack.c.bf16 %v1401_v28, %v1400_v3  ;;  %v1212_v34 = vadd.f32 %v2919_v40, %v791_v13  ;;  %v1244_v36 = vadd.f32 %v2919_v40, %v919_v14 }
 0x16d   : > { %v2197_v32 = vpack.c.bf16 %v1433_v29, %v1432_v15  ;;  %v1406_v33 = vsel %vm1278_vm8, %v1214_v12, %v1342_v25  ;;  %2274 = vst [vmem:[%s2935_s24 + $0xa8] sm:$0xff] %v2202_v27   ;;  %vm1310_vm9 = vcmp.ge.f32.partialorder %v1246_v30, 0.0  ;;  %v1374_v35 = vmul.f32 0.1, %v1246_v30 }
 0x16e   : > { %v1215_v37 = vadd.f32 %v2356_v17, %v2919_v40  ;;  %2257 = vst [vmem:[%s2935_s24 + $0x20] sm:$0xff] %v2117_v31   ;;  %vm1276_vm10 = vcmp.ge.f32.partialorder %v1212_v34, 0.0  ;;  %v1340_v38 = vmul.f32 0.1, %v1212_v34  ;;  %v1247_v39 = vadd.f32 %v2388_v18, %v2919_v40  ;;  %v2359_v42 = vpop.f32.mrb[16].mxu0  ;;  %v2391_v43 = vpop.f32.mrb[16].mxu1 }
 0x16f   : > { %2273 = vst [vmem:[%s2935_s24 + $0xa0] sm:$0xff] %v2197_v32   ;;  %v1213_v41 = vadd.f32 %v2919_v40, %v794_v22  ;;  %v1438_v44 = vsel %vm1310_vm9, %v1246_v30, %v1374_v35  ;;  %vm1308_vm11 = vcmp.ge.f32.partialorder %v1244_v36, 0.0  ;;  %v1372_v45 = vmul.f32 0.1, %v1244_v36  ;;  %v807_v46 = vpop.f32.mrb[17].mxu0  ;;  %v935_v47 = vpop.f32.mrb[17].mxu1 }
 0x170   : > { %vm1279_vm12 = vcmp.ge.f32.partialorder %v1215_v37, 0.0  ;;  %v1404_v48 = vsel %vm1276_vm10, %v1212_v34, %v1340_v38  ;;  %v1343_v49 = vmul.f32 0.1, %v1215_v37  ;;  %vm1311_vm13 = vcmp.ge.f32.partialorder %v1247_v39, 0.0  ;;  %v2360_v51 = vpop.f32.mrb[18].mxu0  ;;  %v2392_v55 = vpop.f32.mrb[18].mxu1 }
 0x171   : > { %v1375_v50 = vmul.f32 0.1, %v1247_v39  ;;  %v1436_v52 = vsel %vm1308_vm11, %v1244_v36, %v1372_v45  ;;  %vm1277_vm14 = vcmp.ge.f32.partialorder %v1213_v41, 0.0  ;;  %v1341_v53 = vmul.f32 0.1, %v1213_v41  ;;  %v810_v56 = vpop.f32.mrb[19].mxu0 }
 0x172   : > { %v1245_v54 = vadd.f32 %v2919_v40, %v922_v26  ;;  %v1407_v57 = vsel %vm1279_vm12, %v1215_v37, %v1343_v49  ;;  %v1218_v59 = vadd.f32 %v2359_v42, %v2919_v40  ;;  %v1250_v60 = vadd.f32 %v2391_v43, %v2919_v40  ;;  %v938_v61 = vpop.f32.mrb[19].mxu1 }
 0x173   : > { %v1439_v58 = vsel %vm1311_vm13, %v1247_v39, %v1375_v50  ;;  %v2132_v62 = vpack.c.bf16 %v1407_v57, %v1406_v33  ;;  %v1405_v0 = vsel %vm1277_vm14, %v1213_v41, %v1341_v53  ;;  %v1216_v5 = vadd.f32 %v2919_v40, %v807_v46 }
 0x174   : > { %v2212_v63 = vpack.c.bf16 %v1439_v58, %v1438_v44  ;;  %vm1309_vm15 = vcmp.ge.f32.partialorder %v1245_v54, 0.0  ;;  %v2127_v1 = vpack.c.bf16 %v1405_v0, %v1404_v48  ;;  %v1373_v2 = vmul.f32 0.1, %v1245_v54 }
 0x175   : > { %vm1282_vm0 = vcmp.ge.f32.partialorder %v1218_v59, 0.0  ;;  %v1346_v3 = vmul.f32 0.1, %v1218_v59  ;;  %2260 = vst [vmem:[%s2935_s24 + $0x38] sm:$0xff] %v2132_v62   ;;  %vm1314_vm1 = vcmp.ge.f32.partialorder %v1250_v60, 0.0  ;;  %v1248_v6 = vadd.f32 %v2919_v40, %v935_v47 }
 0x176   : > { %2276 = vst [vmem:[%s2935_s24 + $0xb8] sm:$0xff] %v2212_v63   ;;  %v1378_v4 = vmul.f32 0.1, %v1250_v60  ;;  %2259 = vst [vmem:[%s2935_s24 + $0x30] sm:$0xff] %v2127_v1   ;;  %v1437_v7 = vsel %vm1309_vm15, %v1245_v54, %v1373_v2  ;;  %v1219_v9 = vadd.f32 %v2360_v51, %v2919_v40  ;;  %v1251_v10 = vadd.f32 %v2392_v55, %v2919_v40  ;;  %v2363_v11 = vpop.f32.mrb[20].mxu0  ;;  %v2395_v12 = vpop.f32.mrb[20].mxu1 }
 0x177   : > { %v1410_v8 = vsel %vm1282_vm0, %v1218_v59, %v1346_v3  ;;  %v2207_v13 = vpack.c.bf16 %v1437_v7, %v1436_v52  ;;  %vm1280_vm2 = vcmp.ge.f32.partialorder %v1216_v5, 0.0  ;;  %v1344_v15 = vmul.f32 0.1, %v1216_v5  ;;  %v823_v16 = vpop.f32.mrb[21].mxu0  ;;  %v951_v17 = vpop.f32.mrb[21].mxu1 }
 0x178   : > { %v1442_v14 = vsel %vm1314_vm1, %v1250_v60, %v1378_v4  ;;  %vm1312_vm3 = vcmp.ge.f32.partialorder %v1248_v6, 0.0  ;;  %v1376_v18 = vmul.f32 0.1, %v1248_v6  ;;  %vm1283_vm4 = vcmp.ge.f32.partialorder %v1219_v9, 0.0  ;;  %v2364_v23 = vpop.f32.mrb[22].mxu0  ;;  %v2396_v24 = vpop.f32.mrb[22].mxu1 }
 0x179   : > { %v1347_v19 = vmul.f32 0.1, %v1219_v9  ;;  %2275 = vst [vmem:[%s2935_s24 + $0xb0] sm:$0xff] %v2207_v13   ;;  %v1408_v20 = vsel %vm1280_vm2, %v1216_v5, %v1344_v15  ;;  %vm1315_vm5 = vcmp.ge.f32.partialorder %v1251_v10, 0.0  ;;  %v1379_v21 = vmul.f32 0.1, %v1251_v10 }
 0x17a   : > { %v1217_v22 = vadd.f32 %v2919_v40, %v810_v56  ;;  %v1440_v25 = vsel %vm1312_vm3, %v1248_v6, %v1376_v18  ;;  %v1249_v27 = vadd.f32 %v2919_v40, %v938_v61  ;;  %v1222_v28 = vadd.f32 %v2363_v11, %v2919_v40  ;;  %v826_v29 = vpop.f32.mrb[23].mxu0  ;;  %v954_v30 = vpop.f32.mrb[23].mxu1 }
 0x17b   : > { %v1411_v26 = vsel %vm1283_vm4, %v1219_v9, %v1347_v19  ;;  %v1443_v32 = vsel %vm1315_vm5, %v1251_v10, %v1379_v21  ;;  %v1254_v38 = vadd.f32 %v2395_v12, %v2919_v40  ;;  %v1220_v39 = vadd.f32 %v2919_v40, %v823_v16 }
 0x17c   : > { %v2142_v31 = vpack.c.bf16 %v1411_v26, %v1410_v8  ;;  %vm1281_vm6 = vcmp.ge.f32.partialorder %v1217_v22, 0.0  ;;  %v1345_v33 = vmul.f32 0.1, %v1217_v22  ;;  %v2222_v34 = vpack.c.bf16 %v1443_v32, %v1442_v14 }
 0x17d   : > { %vm1313_vm7 = vcmp.ge.f32.partialorder %v1249_v27, 0.0  ;;  %v1377_v35 = vmul.f32 0.1, %v1249_v27  ;;  %vm1286_vm8 = vcmp.ge.f32.partialorder %v1222_v28, 0.0  ;;  %v1350_v37 = vmul.f32 0.1, %v1222_v28 }
 0x17e   : > { %2262 = vst [vmem:[%s2935_s24 + $0x48] sm:$0xff] %v2142_v31   ;;  %v1409_v36 = vsel %vm1281_vm6, %v1217_v22, %v1345_v33  ;;  %2278 = vst [vmem:[%s2935_s24 + $0xc8] sm:$0xff] %v2222_v34   ;;  %v1252_v43 = vadd.f32 %v2919_v40, %v951_v17  ;;  %v1223_v44 = vadd.f32 %v2364_v23, %v2919_v40  ;;  %v2367_v45 = vpop.f32.mrb[24].mxu0  ;;  %v2399_v46 = vpop.f32.mrb[24].mxu1  ;;  %vm1318_vm9 = vcmp.ge.f32.partialorder %v1254_v38, 0.0 }
 0x17f   : > { %v2137_v41 = vpack.c.bf16 %v1409_v36, %v1408_v20  ;;  %v1441_v42 = vsel %vm1313_vm7, %v1249_v27, %v1377_v35  ;;  %v1382_v48 = vmul.f32 0.1, %v1254_v38  ;;  %v839_v49 = vpop.f32.mrb[25].mxu0  ;;  %v967_v50 = vpop.f32.mrb[25].mxu1  ;;  %v1414_v51 = vsel %vm1286_vm8, %v1222_v28, %v1350_v37 }
 0x180   : > { %v2217_v47 = vpack.c.bf16 %v1441_v42, %v1440_v25  ;;  %vm1284_vm10 = vcmp.ge.f32.partialorder %v1220_v39, 0.0  ;;  %v1348_v52 = vmul.f32 0.1, %v1220_v39  ;;  %v1380_v53 = vmul.f32 0.1, %v1252_v43  ;;  %v2368_v56 = vpop.f32.mrb[26].mxu0 }
 0x181   : > { %2261 = vst [vmem:[%s2935_s24 + $0x40] sm:$0xff] %v2137_v41   ;;  %vm1316_vm11 = vcmp.ge.f32.partialorder %v1252_v43, 0.0  ;;  %vm1287_vm12 = vcmp.ge.f32.partialorder %v1223_v44, 0.0  ;;  %v1351_v54 = vmul.f32 0.1, %v1223_v44  ;;  %v1255_v55 = vadd.f32 %v2396_v24, %v2919_v40  ;;  %v2400_v57 = vpop.f32.mrb[26].mxu1 }
 0x182   : > { %2277 = vst [vmem:[%s2935_s24 + $0xc0] sm:$0xff] %v2217_v47   ;;  %v1446_v58 = vsel %vm1318_vm9, %v1254_v38, %v1382_v48  ;;  %v1412_v59 = vsel %vm1284_vm10, %v1220_v39, %v1348_v52  ;;  %v1221_v60 = vadd.f32 %v2919_v40, %v826_v29  ;;  %v1253_v61 = vadd.f32 %v2919_v40, %v954_v30  ;;  %v842_v62 = vpop.f32.mrb[27].mxu0  ;;  %v970_v63 = vpop.f32.mrb[27].mxu1 }
 0x183   : > { %v1415_v0 = vsel %vm1287_vm12, %v1223_v44, %v1351_v54  ;;  %vm1319_vm13 = vcmp.ge.f32.partialorder %v1255_v55, 0.0  ;;  %v1383_v1 = vmul.f32 0.1, %v1255_v55  ;;  %v1226_v2 = vadd.f32 %v2367_v45, %v2919_v40 }
 0x184   : > { %v2152_v3 = vpack.c.bf16 %v1415_v0, %v1414_v51  ;;  %vm1285_vm14 = vcmp.ge.f32.partialorder %v1221_v60, 0.0  ;;  %v1349_v4 = vmul.f32 0.1, %v1221_v60  ;;  %vm1317_vm15 = vcmp.ge.f32.partialorder %v1253_v61, 0.0 }
 0x185   : > { %v1447_v5 = vsel %vm1319_vm13, %v1255_v55, %v1383_v1  ;;  %v1381_v6 = vmul.f32 0.1, %v1253_v61  ;;  %vm1290_vm0 = vcmp.ge.f32.partialorder %v1226_v2, 0.0  ;;  %v1354_v7 = vmul.f32 0.1, %v1226_v2 }
 0x186   : > { %2264 = vst [vmem:[%s2935_s24 + $0x58] sm:$0xff] %v2152_v3   ;;  %v2232_v8 = vpack.c.bf16 %v1447_v5, %v1446_v58  ;;  %v1413_v9 = vsel %vm1285_vm14, %v1221_v60, %v1349_v4  ;;  %v1258_v10 = vadd.f32 %v2399_v46, %v2919_v40  ;;  %v1224_v11 = vadd.f32 %v2919_v40, %v839_v49  ;;  %v2371_v12 = vpop.f32.mrb[28].mxu0  ;;  %v2403_v13 = vpop.f32.mrb[28].mxu1 }
 0x187   : > { %v1444_v14 = vsel %vm1316_vm11, %v1252_v43, %v1380_v53  ;;  %v2147_v15 = vpack.c.bf16 %v1413_v9, %v1412_v59  ;;  %v1445_v16 = vsel %vm1317_vm15, %v1253_v61, %v1381_v6  ;;  %v1256_v17 = vadd.f32 %v2919_v40, %v967_v50  ;;  %v855_v18 = vpop.f32.mrb[29].mxu0  ;;  %v983_v19 = vpop.f32.mrb[29].mxu1 }
 0x188   : > { %2280 = vst [vmem:[%s2935_s24 + $0xd8] sm:$0xff] %v2232_v8   ;;  %v2227_v20 = vpack.c.bf16 %v1445_v16, %v1444_v14  ;;  %vm1322_vm1 = vcmp.ge.f32.partialorder %v1258_v10, 0.0  ;;  %v1386_v21 = vmul.f32 0.1, %v1258_v10  ;;  %vm1288_vm2 = vcmp.ge.f32.partialorder %v1224_v11, 0.0  ;;  %v2372_v22 = vpop.f32.mrb[30].mxu0 }
 0x189   : > { %v2404_v23 = vpop.f32.mrb[30].mxu1  ;;  %2263 = vst [vmem:[%s2935_s24 + $0x50] sm:$0xff] %v2147_v15   ;;  %v1418_v24 = vsel %vm1290_vm0, %v1226_v2, %v1354_v7  ;;  %v1352_v25 = vmul.f32 0.1, %v1224_v11  ;;  %vm1320_vm3 = vcmp.ge.f32.partialorder %v1256_v17, 0.0  ;;  %v1227_v26 = vadd.f32 %v2368_v56, %v2919_v40  ;;  %v858_v27 = vpop.f32.mrb[31].mxu0 }
 0x18a   : > { %2279 = vst [vmem:[%s2935_s24 + $0xd0] sm:$0xff] %v2227_v20   ;;  %v1384_v28 = vmul.f32 0.1, %v1256_v17  ;;  %v1259_v29 = vadd.f32 %v2400_v57, %v2919_v40  ;;  %v1225_v30 = vadd.f32 %v2919_v40, %v842_v62  ;;  %v1257_v31 = vadd.f32 %v2919_v40, %v970_v63  ;;  %v986_v32 = vpop.f32.mrb[31].mxu1 }
 0x18b   : > { %v1450_v33 = vsel %vm1322_vm1, %v1258_v10, %v1386_v21  ;;  %v1416_v34 = vsel %vm1288_vm2, %v1224_v11, %v1352_v25  ;;  %vm1291_vm4 = vcmp.ge.f32.partialorder %v1227_v26, 0.0  ;;  %v1355_v35 = vmul.f32 0.1, %v1227_v26 }
 0x18c   : > { %vm1323_vm5 = vcmp.ge.f32.partialorder %v1259_v29, 0.0  ;;  %v1387_v36 = vmul.f32 0.1, %v1259_v29  ;;  %vm1289_vm6 = vcmp.ge.f32.partialorder %v1225_v30, 0.0  ;;  %v1353_v37 = vmul.f32 0.1, %v1225_v30 }
 0x18d   : > { %v1419_v38 = vsel %vm1291_vm4, %v1227_v26, %v1355_v35  ;;  %vm1321_vm7 = vcmp.ge.f32.partialorder %v1257_v31, 0.0  ;;  %v1385_v39 = vmul.f32 0.1, %v1257_v31  ;;  %v1230_v41 = vadd.f32 %v2371_v12, %v2919_v40 }
 0x18e   : > { %v2162_v42 = vpack.c.bf16 %v1419_v38, %v1418_v24  ;;  %v1451_v43 = vsel %vm1323_vm5, %v1259_v29, %v1387_v36  ;;  %v1417_v44 = vsel %vm1289_vm6, %v1225_v30, %v1353_v37  ;;  %v1262_v45 = vadd.f32 %v2403_v13, %v2919_v40 }
 0x18f   : > { %v1448_v46 = vsel %vm1320_vm3, %v1256_v17, %v1384_v28  ;;  %v2242_v47 = vpack.c.bf16 %v1451_v43, %v1450_v33  ;;  %v2157_v48 = vpack.c.bf16 %v1417_v44, %v1416_v34  ;;  %v1449_v49 = vsel %vm1321_vm7, %v1257_v31, %v1385_v39 }
 0x190   : > { %2266 = vst [vmem:[%s2935_s24 + $0x68] sm:$0xff] %v2162_v42   ;;  %v2237_v50 = vpack.c.bf16 %v1449_v49, %v1448_v46  ;;  %vm1294_vm8 = vcmp.ge.f32.partialorder %v1230_v41, 0.0  ;;  %v1358_v51 = vmul.f32 0.1, %v1230_v41  ;;  %v1390_v52 = vmul.f32 0.1, %v1262_v45 }
 0x191   : > { %2282 = vst [vmem:[%s2935_s24 + $0xe8] sm:$0xff] %v2242_v47   ;;  %2265 = vst [vmem:[%s2935_s24 + $0x60] sm:$0xff] %v2157_v48   ;;  %v1228_v53 = vadd.f32 %v2919_v40, %v855_v18  ;;  %v1260_v54 = vadd.f32 %v2919_v40, %v983_v19  ;;  %v1231_v55 = vadd.f32 %v2372_v22, %v2919_v40  ;;  %vm1326_vm9 = vcmp.ge.f32.partialorder %v1262_v45, 0.0 }
 0x192   : > { %v1263_v56 = vadd.f32 %v2404_v23, %v2919_v40  ;;  %2281 = vst [vmem:[%s2935_s24 + $0xe0] sm:$0xff] %v2237_v50   ;;  %v1229_v57 = vadd.f32 %v2919_v40, %v858_v27  ;;  %v1261_v58 = vadd.f32 %v2919_v40, %v986_v32  ;;  %v1422_v59 = vsel %vm1294_vm8, %v1230_v41, %v1358_v51 }
 0x193   : > { %vm1292_vm10 = vcmp.ge.f32.partialorder %v1228_v53, 0.0  ;;  %v1356_v60 = vmul.f32 0.1, %v1228_v53  ;;  %v1388_v61 = vmul.f32 0.1, %v1260_v54  ;;  %vm1295_vm11 = vcmp.ge.f32.partialorder %v1231_v55, 0.0 }
 0x194   : > { %v1359_v62 = vmul.f32 0.1, %v1231_v55  ;;  %vm1327_vm12 = vcmp.ge.f32.partialorder %v1263_v56, 0.0  ;;  %v1391_v63 = vmul.f32 0.1, %v1263_v56  ;;  %v1454_v0 = vsel %vm1326_vm9, %v1262_v45, %v1390_v52 }
 0x195   : > { %vm1324_vm13 = vcmp.ge.f32.partialorder %v1260_v54, 0.0  ;;  %vm1293_vm14 = vcmp.ge.f32.partialorder %v1229_v57, 0.0  ;;  %v1357_v1 = vmul.f32 0.1, %v1229_v57  ;;  %vm1325_vm15 = vcmp.ge.f32.partialorder %v1261_v58, 0.0 }
 0x196   : > { %v1423_v2 = vsel %vm1295_vm11, %v1231_v55, %v1359_v62  ;;  %v1455_v3 = vsel %vm1327_vm12, %v1263_v56, %v1391_v63  ;;  %v1389_v40 = vmul.f32 0.1, %v1261_v58  ;;  %v1420_v4 = vsel %vm1292_vm10, %v1228_v53, %v1356_v60 }
 0x197   : > { %v2172_v5 = vpack.c.bf16 %v1423_v2, %v1422_v59  ;;  %v2252_v6 = vpack.c.bf16 %v1455_v3, %v1454_v0  ;;  %v1421_v7 = vsel %vm1293_vm14, %v1229_v57, %v1357_v1  ;;  %v1452_v8 = vsel %vm1324_vm13, %v1260_v54, %v1388_v61 }
 0x198   : > { %v2167_v9 = vpack.c.bf16 %v1421_v7, %v1420_v4  ;;  %v1453_v10 = vsel %vm1325_vm15, %v1261_v58, %v1389_v40 }
 0x199   : > { %2268 = vst [vmem:[%s2935_s24 + $0x78] sm:$0xff] %v2172_v5   ;;  %2284 = vst [vmem:[%s2935_s24 + $0xf8] sm:$0xff] %v2252_v6   ;;  %v2247_v11 = vpack.c.bf16 %v1453_v10, %v1452_v8 }
 0x19a   : > { %2267 = vst [vmem:[%s2935_s24 + $0x70] sm:$0xff] %v2167_v9  }
 0x19b   : > { %2283 = vst [vmem:[%s2935_s24 + $0xf0] sm:$0xff] %v2247_v11  }
 0x19c   : > { %2609 = shalt.err (!%p2606_p5)
}
 0x19d   : > { %s2610_s6 = scalar_lea.hbm %s3032_s18, 4096  ;;  %s2614_s19 = scalar_lea.hbm %s3089_s3, 16384 }
 0x19e   : > { %p2611_p9 = scmp.ne.s32.totalorder %s3032_s18, %s2610_s6  ;;  %p2615_p3 = scmp.lt.u32.totalorder %s3032_s18, %s3089_s3 }
 0x19f   : > { %p2616_p7 = scmp.lt.u32.totalorder %s2614_s19, %s2610_s6  ;;  %p2618_p4 = scmp.lt.u32.totalorder %s2610_s6, %s3032_s18 }
 0x1a0   : > { %p2612_p1 = pnand %p2611_p9, %p2809_p11 }
 0x1a1   : > { %p2617_p13 = por %p2616_p7, %p2615_p3 }
 0x1a2   : > { %p2613_p2 = pneg %p2612_p1 }
 0x1a3   : > { %p2619_p6 = por %p2618_p4, %p2617_p13 }
 0x1a5   : > { %p2620_p8 = pnand %p2619_p6, %p2613_p2 }
 0x1a7   : > { %2623 = shalt.err (!%p2620_p8)
}
 0x1a8   : > { %s2689_s24 = smov 64   ;;  %s2690_s10 = smov 4  }
 0x1a9   : > { %2427 = dma.vmem_to_hbm [thread:$0]  (%p2809_p11), %s3034_s11, 4096, %s3032_s18, %s1777_s25, %s2689_s24, %s2689_s24, %s2690_s10  }
 0x1aa PF: > { %p2444_p12 = scmp.ge.s32.totalorder %s2682_s17, 2  ;;  %s1806_s9 = sand.u32 1, %s2662_s12  }
 0x1ab   : > { %p3107_p10 = scmp.ne.s32.totalorder %s3097_s23, 0  ;;  %s1807_s15 = scalar_lea.sflag [#allocation5], %s1806_s9 }
 0x1ad   : > { %p2438_p0 = pnand %p2444_p12, %p3107_p10 }
 0x1af   : > { %2657 = dma.done.wait (!%p2438_p0), %s1807_s15, 4096  }
 0x1b0   : > { %2659 = vsyncadd (!%p2438_p0), %s1807_s15, 4294963200  ;;  %s20_s17 = sadd.s32 1, %s2682_s17   ;;  %s3108_s12 = smov %s2666_s13 }
 0x1b1   : > { %p17_p5 = scmp.ge.s32.totalorder %s20_s17, 6   ;;  %s3109_s13 = smov %s2670_s14 }
 0x1b2   : > { %s3110_s14 = smov %s2818_s5  ;;  %s3111_s15 = smov %s2678_s16 }
 0x1b3   : > { %s3112_s16 = smov %s3114_s28  ;;  %19 = sbr.rel (!%p17_p5) target bundleno = 7 (0x7), region = 93 }
 0x1ba   :  { %1812 = vsyncpa [#allocation4], 1 }
 0x1bb   :  { %1814 = vsyncpa [#allocation4 + $0x1], 1 }
 0x1bc   :  { %1815 = vsyncpa [#allocation7], 1 }
 0x1bd   :  { %1816 = vsyncpa [#allocation5], 1 }
 0x1be   :  { %1818 = vsyncpa [#allocation5 + $0x1], 1 }

</bundles_post_ra>
